<compile_context>
chip_gen: v7x
topology: tpu7x:2x2x1
jax: 0.10.0
libtpu: 0.0.40
codegen_flags: <defaults>
</compile_context>

<pallas_src>
import jax
import jax.numpy as jnp
from jax.experimental import pallas as pl
from jax.experimental.pallas import tpu as pltpu


def _conv1x1_kernel(x_ref, w_ref, b_ref, o_ref):
    # x_ref: (1, C, Thw) native dtype   w_ref: (ncls, C) bf16
    # b_ref: (ncls, 1) f32              o_ref: (1, ncls, Thw) out_dtype
    # Cast to the MXU compute dtype here (VPU slots are idle on this HBM-bound
    # kernel) instead of a standalone XLA cast pass over HBM.
    x = x_ref[0].astype(w_ref.dtype)
    acc = jnp.dot(w_ref[...], x, preferred_element_type=jnp.float32)
    o_ref[0] = (acc + b_ref[...]).astype(o_ref.dtype)


def _pick_tile_hw(HW, cap):
    """Largest spatial tile <= cap: full HW if it fits; else the biggest
    multiple of 128 that divides HW (so the last tile is not masked); else cap
    (Pallas masks the ragged last tile)."""
    if HW <= cap:
        return HW
    top = max(128, (cap // 128) * 128)
    for tile in range(top, 127, -128):
        if HW % tile == 0:
            return tile
    return top


def conv_seg_pallas(x_nchw, weight, bias, *, out_dtype=jnp.bfloat16,
                    compute_dtype=jnp.bfloat16, max_tile_hw=16384,
                    vmem_data_budget_bytes=24 << 20):
    """1x1 conv (conv_seg) via a tiled Pallas matmul, keeping NCHW layout.

    x_nchw: (B, C, H, W)  (any float dtype; cast to compute_dtype inside the kernel)
    weight: (num_classes, C)   (PyTorch Conv2d weight squeezed over 1x1 kernel dims)
    bias:   (num_classes,)
    returns (B, num_classes, H, W) in out_dtype
    """
    B, C, H, W = x_nchw.shape
    ncls = weight.shape[0]
    HW = H * W

    # Free reshapes only — no transposes, no padding copies, no activation cast.
    x = x_nchw.reshape(B, C, HW)                               # (B, C, HW) native dtype
    w = weight.astype(compute_dtype)                           # (ncls, C), resident, tiny
    b = bias.reshape(ncls, 1).astype(jnp.float32)              # (ncls, 1)

    x_item = jnp.dtype(x.dtype).itemsize
    out_item = jnp.dtype(out_dtype).itemsize
    w_item = jnp.dtype(compute_dtype).itemsize

    # VMEM accounting (everything BlockSpec double-buffers):
    #   constants:  2 * (weight + bias)
    #   per pixel:  2 * (C * x_itemsize  +  ncls * out_itemsize)
    const_bytes = 2 * (ncls * C * w_item + ncls * 4)
    per_px_bytes = 2 * (C * x_item + ncls * out_item)
    cap = (vmem_data_budget_bytes - const_bytes) // per_px_bytes
    cap = max(128, (int(cap) // 128) * 128)
    cap = min(cap, int(max_tile_hw))

    tile_hw = _pick_tile_hw(HW, cap)
    n_hw = pl.cdiv(HW, tile_hw)

    # Explicit scoped-VMEM limit: actual footprint + headroom, clamped so the
    # config is safe on v7x (64 MiB physical) while raising v5e's 16 MiB default.
    footprint = const_bytes + per_px_bytes * tile_hw
    vmem_limit = int(min(48 << 20, max(footprint + (8 << 20), 32 << 20)))

    grid = (B, n_hw)
    out = pl.pallas_call(
        _conv1x1_kernel,
        out_shape=jax.ShapeDtypeStruct((B, ncls, HW), out_dtype),
        grid_spec=pltpu.PrefetchScalarGridSpec(
            num_scalar_prefetch=0,
            grid=grid,
            in_specs=[
                pl.BlockSpec((1, C, tile_hw), lambda bi, j: (bi, 0, j)),  # activations
                pl.BlockSpec((ncls, C), lambda bi, j: (0, 0)),            # weight (resident)
                pl.BlockSpec((ncls, 1), lambda bi, j: (0, 0)),            # bias (resident)
            ],
            out_specs=pl.BlockSpec((1, ncls, tile_hw), lambda bi, j: (bi, 0, j)),
        ),
        compiler_params=pltpu.CompilerParams(
            dimension_semantics=("parallel", "parallel"),
            vmem_limit_bytes=vmem_limit),
    )(x, w, b)

    return out.reshape(B, ncls, H, W)   # free reshape: already NCHW ordering


class BaseDecodeHeadPallas:
    """JAX/Pallas counterpart of BaseDecodeHead (input_transform=None, in_index=-1).

    Only the inference forward path is materialized:
      inputs[in_index] -> (dropout: identity in eval) -> conv_seg (1x1 conv kernel).
    """

    def __init__(self, in_channels, channels, *, num_classes,
                 dropout_ratio=0.1, in_index=-1, out_dtype=jnp.bfloat16, key=None):
        assert isinstance(in_channels, int) and isinstance(in_index, int)
        self.in_channels = in_channels
        self.channels = channels
        self.num_classes = num_classes
        self.dropout_ratio = dropout_ratio
        self.in_index = in_index
        self.out_dtype = out_dtype

        if key is None:
            key = jax.random.PRNGKey(0)
        # init_weights(): normal_init(conv_seg, mean=0, std=0.01), bias=0
        self.conv_seg_weight = 0.01 * jax.random.normal(
            key, (num_classes, channels), dtype=jnp.float32)
        self.conv_seg_bias = jnp.zeros((num_classes,), dtype=jnp.float32)

    def _transform_inputs(self, inputs):
        # input_transform is None -> single select
        return inputs[self.in_index]

    def cls_seg(self, feat):
        # TODO(synk): Dropout2d is identity at inference; training-mode channel
        # dropout (RNG mask) is not emitted here.
        # TODO(synk): if the downstream consumer is argmax (class map), fuse the
        # ncls-reduction into the kernel and emit int32 to cut writeback further.
        return conv_seg_pallas(feat, self.conv_seg_weight, self.conv_seg_bias,
                               out_dtype=self.out_dtype)

    def forward(self, inputs):
        feat = self._transform_inputs(inputs)
        return self.cls_seg(feat)


if __name__ == "__main__":
    key = jax.random.PRNGKey(0)
    k_feat, k_w = jax.random.split(key)

    B, C, H, W = 2, 4, 16, 16      # feature map after decode modules: channels=C
    num_classes = 8

    head = BaseDecodeHeadPallas(in_channels=C, channels=C,
                                num_classes=num_classes, key=k_w)

    # "multi-level features" list; in_index=-1 selects the last one.
    feat = jax.random.normal(k_feat, (B, C, H, W), dtype=jnp.float32)
    inputs = [feat]

    out = head.forward(inputs)
    out = jax.block_until_ready(out)
    assert out.shape == (B, num_classes, H, W)
    assert out.dtype == jnp.bfloat16

    # Reference in plain JAX: the kernel feeds the MXU bf16 operands with f32
    # accumulation and writes bf16 logits, so compare against the
    # bf16-rounded-input einsum with a bf16-scale tolerance.
    feat_r = feat.astype(jnp.bfloat16).astype(jnp.float32)
    w_r = head.conv_seg_weight.astype(jnp.bfloat16).astype(jnp.float32)
    ref = jnp.einsum("bchw,nc->bnhw", feat_r, w_r) \
        + head.conv_seg_bias[None, :, None, None]
    assert jnp.allclose(out.astype(jnp.float32), ref, atol=2e-3, rtol=2e-2), \
        "mismatch vs reference"

    print("KERNEL_OK")
</pallas_src>

<mosaic_0001>
module attributes {stable_mosaic.version = 11 : i64} {
  func.func @_conv1x1_kernel(%arg0: i32, %arg1: i32, %arg2: memref<1x4x256xf32, #tpu.memory_space<vmem>>, %arg3: memref<8x4xbf16, #tpu.memory_space<vmem>>, %arg4: memref<8x1xf32, #tpu.memory_space<vmem>>, %arg5: memref<1x8x256xbf16, #tpu.memory_space<vmem>>) attributes {dimension_semantics = [#tpu.dimension_semantics<parallel>, #tpu.dimension_semantics<parallel>], iteration_bounds = array<i64: 2, 1>, scalar_prefetch = 0 : i64, scratch_operands = 0 : i64, tpu.core_type = #tpu.core_type<tc>, window_params = [{transform_indices = @transform_0, window_bounds = array<i64: 1, 4, 256>}, {pipeline_mode = #tpu.pipeline_mode<synchronous>, transform_indices = @transform_1, window_bounds = array<i64: 8, 4>}, {pipeline_mode = #tpu.pipeline_mode<synchronous>, transform_indices = @transform_2, window_bounds = array<i64: 8, 1>}, {transform_indices = @transform_3, window_bounds = array<i64: 1, 8, 256>}]} {
    %c0 = arith.constant 0 : index
    %c0_0 = arith.constant 0 : index
    %c0_1 = arith.constant 0 : index
    %0 = vector.load %arg2[%c0, %c0_0, %c0_1] : memref<1x4x256xf32, #tpu.memory_space<vmem>>, vector<1x4x256xf32>
    %1 = vector.shape_cast %0 : vector<1x4x256xf32> to vector<4x256xf32>
    %2 = arith.truncf %1 : vector<4x256xf32> to vector<4x256xbf16>
    %c0_2 = arith.constant 0 : index
    %c0_3 = arith.constant 0 : index
    %3 = vector.load %arg3[%c0_2, %c0_3] : memref<8x4xbf16, #tpu.memory_space<vmem>>, vector<8x4xbf16>
    %cst = arith.constant dense<0.000000e+00> : vector<8x256xf32>
    %4 = tpu.matmul %3, %2, %cst {dimension_numbers = #tpu.dot_dimension_numbers<[1], [0], [0], [1], [0, 0, 1, 1], [], []>} : vector<8x4xbf16>, vector<4x256xbf16>, vector<8x256xf32> -> vector<8x256xf32>
    %c0_4 = arith.constant 0 : index
    %c0_5 = arith.constant 0 : index
    %5 = vector.load %arg4[%c0_4, %c0_5] : memref<8x1xf32, #tpu.memory_space<vmem>>, vector<8x1xf32>
    %6 = vector.broadcast %5 : vector<8x1xf32> to vector<8x256xf32>
    %7 = arith.addf %4, %6 : vector<8x256xf32>
    %8 = arith.truncf %7 : vector<8x256xf32> to vector<8x256xbf16>
    %c0_6 = arith.constant 0 : index
    %c0_7 = arith.constant 0 : index
    %c0_8 = arith.constant 0 : index
    %9 = vector.load %arg5[%c0_6, %c0_7, %c0_8] : memref<1x8x256xbf16, #tpu.memory_space<vmem>>, vector<1x8x256xbf16>
    %10 = vector.shape_cast %9 : vector<1x8x256xbf16> to vector<8x256xbf16>
    %11 = vector.shape_cast %8 : vector<8x256xbf16> to vector<1x8x256xbf16>
    tpu.vector_store %arg5[%c0_6, %c0_7, %c0_8], %11 {strides = array<i32>} : memref<1x8x256xbf16, #tpu.memory_space<vmem>>, vector<1x8x256xbf16>,
    return
  }
  func.func @transform_0(%arg0: i32, %arg1: i32) -> (i32, i32, i32) {
    %c0_i32 = arith.constant 0 : i32
    %c0_i32_0 = arith.constant 0 : i32
    return %arg0, %c0_i32, %arg1 : i32, i32, i32
  }
  func.func @transform_1(%arg0: i32, %arg1: i32) -> (i32, i32) {
    %c0_i32 = arith.constant 0 : i32
    %c0_i32_0 = arith.constant 0 : i32
    %c0_i32_1 = arith.constant 0 : i32
    return %c0_i32, %c0_i32_0 : i32, i32
  }
  func.func @transform_2(%arg0: i32, %arg1: i32) -> (i32, i32) {
    %c0_i32 = arith.constant 0 : i32
    %c0_i32_0 = arith.constant 0 : i32
    %c0_i32_1 = arith.constant 0 : i32
    return %c0_i32, %c0_i32_0 : i32, i32
  }
  func.func @transform_3(%arg0: i32, %arg1: i32) -> (i32, i32, i32) {
    %c0_i32 = arith.constant 0 : i32
    %c0_i32_0 = arith.constant 0 : i32
    return %arg0, %c0_i32, %arg1 : i32, i32, i32
  }
}

</mosaic_0001>

<bundles_post_ra>
// kernel: tpu_custom_call.1
= control target key start
LH: loop header
LB: loop body
LE: loop exit
PB: predicated region body
PF: predicated region fallthrough
CT: control target
= control target key end

     0   :  { %8 = vsyncpa [#allocation3], 0  ;;  %s784_s0 = inlined_call_operand.hbm [shape: f32[2,4,256], index: 0, kind: input, shape index: {}]   ;;  %s785_s1 = inlined_call_operand.vmem [shape: bf16[8,4], index: 1, kind: input, shape index: {}]   ;;  %s786_s2 = inlined_call_operand.vmem [shape: f32[8,1], index: 2, kind: input, shape index: {}]   ;;  %s787_s3 = inlined_call_operand.hbm [shape: bf16[2,8,256], index: 3, kind: output, shape index: {}]  }
   0x1   :  { %10 = vsyncpa [#allocation3 + $0x1], 0 }
   0x2   :  { %11 = vsyncpa [#allocation4], 0 }
   0x3   :  { %13 = vsyncpa [#allocation4 + $0x1], 0  ;;  %s606_s12 = smov 0   ;;  %s608_s13 = smov 0  }
   0x4   :  { %s610_s14 = smov 0   ;;  %s612_s15 = smov 0  }
   0x5   :  { %s614_s16 = smov 0   ;;  %s616_s17 = smov 0  }
   0x6 LB: > { %s383_s18 = sadd.s32 4294967295, %s581_s17   ;;  %s384_s19 = sadd.s32 4294967294, %s581_s17   ;;  %s581_s17 = sphi %s616_s17, %s19_s17   ;;  %s577_s16 = sphi %s614_s16, %s803_s16   ;;  %s573_s15 = sphi %s612_s15, %s802_s15   ;;  %s569_s14 = sphi %s610_s14, %s801_s14   ;;  %s565_s13 = sphi %s608_s13, %s800_s13   ;;  %s561_s12 = sphi %s606_s12, %s799_s12  }
   0x7   : > { %s31_s20 = sadd.s32 1, %s577_s16  ;;  %s40_s21 = sadd.s32 1, %s569_s14 }
   0x8   : > { %p33_p0 = scmp.ge.s32.totalorder %s31_s20, 2  ;;  %p47_p1 = scmp.ne.s32.totalorder %s569_s14, %s565_s13 }
   0x9   : > { %p48_p2 = scmp.eq.s32.totalorder %s581_s17, 0  ;;  %p53_p3 = scmp.ne.s32.totalorder %s565_s13, %s561_s12 }
   0xa   : > { %s805_s20 = smov (%p33_p0, %s31_s20), 0  ;;  %p54_p5 = scmp.eq.s32.totalorder %s383_s18, 0 }
   0xb   : > { %p647_p4 = por %p48_p2, %p47_p1  ;;  %s35_s23 = ssub.s32 %s577_s16, %s805_s20 }
   0xc   : > { %p121_p6 = scmp.eq.s32.totalorder %s383_s18, 1  ;;  %p38_p7 = scmp.eq.s32.totalorder %s35_s23, 0 }
   0xd   : > { %p653_p8 = por %p54_p5, %p53_p3  ;;  %p127_p10 = scmp.eq.s32.totalorder %s384_s19, 1 }
   0xe   : > { %p657_p9 = por %p121_p6, %p47_p1  ;;  %p416_p13 = scmp.lt.s32.totalorder %s581_s17, 2 }
   0xf   : > { %s662_s26 = scalar_select %p38_p7, %s569_s14, %s40_s21  }
  0x10   : > { %s791_s25 = scalar_select %p657_p9, 1, 0 }
  0x11   : > { %p664_p11 = por %p127_p10, %p53_p3  ;;  %s153_s28 = sand.u32 1, %s569_s14  }
  0x12   : > { %s387_s29 = sshll.u32 %s153_s28, 3  ;;  %s401_s30 = sshll.u32 %s577_s16, 7 }
  0x13   : > { %s792_s27 = scalar_select %p664_p11, 1, 0 }
  0x14   : > { %s675_s6 = scalar_lea.hbm %s784_s0, %s401_s30  ;;  %s157_s7 = scalar_lea.vmem [#allocation2], %s387_s29 }
  0x15   : > { %s167_s8 = sshll.u32 %s157_s7, 4  ;;  %p681_p0 = pnand %p416_p13, %p647_p4  ;;  %s677_s8 = int_to_ptr.vmem [resolvable:$true] %s167_s8 }
  0x16   : > { %s154_s10 = scalar_lea.sflag [#allocation3], %s153_s28  ;;  %s469_s11 = scalar_lea.hbm %s675_s6, 128 }
  0x17   : > { %p470_p3 = scmp.ne.s32.totalorder %s675_s6, %s469_s11  ;;  %p471_p5 = pneg %p681_p0 }
  0x18   : > { %s474_s21 = scalar_lea.hbm %s784_s0, 256  ;;  %p475_p4 = scmp.lt.u32.totalorder %s675_s6, %s784_s0 }
  0x19   : > { %p472_p6 = pnand %p471_p5, %p470_p3  ;;  %p476_p10 = scmp.lt.u32.totalorder %s474_s21, %s469_s11 }
  0x1a   : > { %p478_p12 = scmp.lt.u32.totalorder %s469_s11, %s675_s6 }
  0x1b   : > { %p473_p7 = pneg %p472_p6  ;;  %p477_p13 = por %p476_p10, %p475_p4 }
  0x1d   : > { %p479_p1 = por %p478_p12, %p477_p13 }
  0x1f   : > { %p480_p2 = pnand %p479_p1, %p473_p7 }
  0x21   : > { %483 = shalt.err (!%p480_p2)
}
  0x22   : > { %s484_s28 = scalar_lea.vmem %s677_s8, 128  ;;  %s583_s29 = smov [#allocation2]  }
  0x23   : > { %p485_p3 = scmp.ne.s32.totalorder %s677_s8, %s484_s28  ;;  %s489_s30 = sshll.u32 %s583_s29, 4  ;;  %s490_s30 = int_to_ptr.vmem [resolvable:$false] %s489_s30 }
  0x24   : > { %s491_s4 = scalar_lea.vmem %s490_s30, 256  ;;  %p492_p9 = scmp.lt.s32.totalorder %s677_s8, %s490_s30 }
  0x25   : > { %p487_p6 = pnand %p485_p3, %p471_p5  ;;  %p493_p4 = scmp.lt.s32.totalorder %s491_s4, %s484_s28 }
  0x27   : > { %p488_p11 = pneg %p487_p6  ;;  %p494_p10 = por %p493_p4, %p492_p9 }
  0x29   : > { %p495_p12 = pnand %p494_p10, %p488_p11 }
  0x2b   : > { %498 = shalt.err (!%p495_p12)
}
  0x2c   : > { %411 = dma.hbm_to_vmem [thread:$0]  (!%p681_p0), %s675_s6, 128, %s677_s8, %s154_s10  }
  0x2d   : > { %p794_p1 = scmp.lt.s32.totalorder %s581_s17, 3  ;;  %p795_p2 = scmp.ge.s32.totalorder %s581_s17, 1 }
  0x2f   : > { %p173_p5 = pnand %p795_p2, %p794_p1 }
  0x30   : > { %s717_s5 = sand.u32 (!%p173_p5), 1, %s565_s13  }
  0x31   : > { %176 = sbr.rel (%p173_p5) target bundleno = 297 (0x129), region = 32  ;;  %s391_s7 = sshll.u32 (!%p173_p5), %s717_s5, 3 }
  0x32   : > { %s179_s11 = scalar_lea.sflag (!%p173_p5), [#allocation3], %s717_s5  ;;  %s182_s18 = scalar_lea.vmem (!%p173_p5), [#allocation2], %s391_s7 }
  0x38   : > { %552 = dma.done.wait (%p653_p8), %s179_s11, 128  }
  0x39   : > { %554 = vsyncadd (%p653_p8), %s179_s11, 4294967168  ;;  %v584_v0 = vmov 0   ;;  %v208_v1 = vld [vmem:[%s182_s18] sm:$0xff]  ;;  %vm225_vm0 = vcmask 1041408   ;;  %vm221_vm1 = vcmask 31744   ;;  %s403_s10 = sshll.u32 %s573_s15, 7 }
  0x3a   : > { %264 = vmatprep.mubr.bf16.mxu0 %v584_v0  ;;  %467 = vset.pattern.permute.xlu0 %v584_v0  ;;  %v215_v2 = vld [vmem:[%s786_s2] sm:$0xff]  ;;  %v210_v3 = vcombine.high %v208_v1, %v208_v1  ;;  %v212_v4 = vpack.c.bf16 %v208_v1, %v208_v1  ;;  %s204_s19 = scalar_lea.vmem [#allocation5], %s391_s7  ;;  %s735_s28 = scalar_lea.hbm %s787_s3, %s403_s10 }
  0x3b   : > { %218 = vperm.xlu0 %467, %v215_v2   ;;  %v214_v7 = vld [vmem:[%s785_s1] sm:$0xf]  ;;  %s299_s21 = sshll.u32 %s204_s19, 4  ;;  %s283_s29 = scalar_lea.sflag [#allocation4], %s717_s5  ;;  %s737_s21 = int_to_ptr.vmem [resolvable:$true] %s299_s21 }
  0x3c   : > { %v213_v5 = vpack.c.bf16 %v210_v3, %v210_v3  ;;  %v227_v6 = vsel %vm225_vm0, %v212_v4, 0  ;;  %s499_s30 = scalar_lea.vmem %s737_s21, 128  ;;  %p796_p9 = scmp.ne.s32.totalorder %s791_s25, 0 }
  0x3d   : > { %p500_p8 = scmp.ne.s32.totalorder %s737_s21, %s499_s30  ;;  %s585_s15 = smov [#allocation5]  }
  0x3e   : > { %393 = vmatprep.subr.msk.bf16.mxu0 %vm225_vm0, %v213_v5  ;;  %s503_s4 = sshll.u32 %s585_s15, 4  ;;  %s504_s4 = int_to_ptr.vmem [resolvable:$false] %s503_s4 }
  0x3f   : > { %233 = vmatpush1.bf16.msra.mxu0 %v227_v6  ;;  %p501_p11 = pnand %p500_p8, %p796_p9  ;;  %s505_s7 = scalar_lea.vmem %s504_s4, 256 }
  0x40   : > { %p506_p7 = scmp.lt.s32.totalorder %s737_s21, %s504_s4  ;;  %p507_p13 = scmp.lt.s32.totalorder %s505_s7, %s499_s30 }
  0x41   : > { %p502_p0 = pneg %p501_p11 }
  0x42   : > { %394 = vmatmul.mubr.msk.bf16.vlgmr.msra.gmra.mrb[0].mxu0 %vm221_vm1, %v214_v7  ;;  %p508_p3 = por %p507_p13, %p506_p7 }
  0x44   : > { %p509_p6 = pnand %p508_p3, %p502_p0 }
  0xba   : > { %v219_v8 = vpop.permute.xlu0 %218 }
 0x115   : > { %v266_v9 = vpop.f32.mrb[0].mxu0 }
 0x116   : > { %v267_v10 = vadd.f32 %v266_v9, %v219_v8  ;;  %v268_v11 = vpop.f32.mrb[1].mxu0 }
 0x117   : > { %v269_v12 = vadd.f32 %v268_v11, %v219_v8  ;;  %v270_v13 = vpop.f32.mrb[2].mxu0 }
 0x118   : > { %v271_v14 = vpop.f32.mrb[3].mxu0 }
 0x119   : > { %v402_v15 = vpack.c.bf16 %v269_v12, %v267_v10 }
 0x11b   : > { %281 = vst [vmem:[%s204_s19] sm:$0xff] %v402_v15 }
 0x11c   : > { %512 = shalt.err (!%p509_p6)
}
 0x11d   : > { %s513_s5 = scalar_lea.hbm %s735_s28, 128  ;;  %s517_s6 = scalar_lea.hbm %s787_s3, 256 }
 0x11e   : > { %p514_p4 = scmp.ne.s32.totalorder %s735_s28, %s513_s5  ;;  %p518_p1 = scmp.lt.u32.totalorder %s735_s28, %s787_s3 }
 0x11f   : > { %p519_p2 = scmp.lt.u32.totalorder %s517_s6, %s513_s5  ;;  %p521_p8 = scmp.lt.u32.totalorder %s513_s5, %s735_s28 }
 0x120   : > { %p515_p10 = pnand %p514_p4, %p796_p9 }
 0x121   : > { %p520_p5 = por %p519_p2, %p518_p1 }
 0x122   : > { %p516_p12 = pneg %p515_p10 }
 0x123   : > { %p522_p11 = por %p521_p8, %p520_p5 }
 0x125   : > { %p523_p0 = pnand %p522_p11, %p516_p12 }
 0x127   : > { %526 = shalt.err (!%p523_p0)
}
 0x128   : > { %406 = dma.vmem_to_hbm [thread:$0]  (%p796_p9), %s737_s21, 128, %s735_s28, %s283_s29  }
 0x129 PF: > { %s311_s24 = sand.u32 1, %s561_s12   ;;  %p797_p7 = scmp.ne.s32.totalorder %s792_s27, 0 }
 0x12a   : > { %p798_p13 = scmp.ge.s32.totalorder %s581_s17, 2  ;;  %s312_s10 = scalar_lea.sflag [#allocation4], %s311_s24 }
 0x12c   : > { %p413_p3 = pnand %p798_p13, %p797_p7 }
 0x12e   : > { %556 = dma.done.wait (!%p413_p3), %s312_s10, 128  }
 0x12f   : > { %558 = vsyncadd (!%p413_p3), %s312_s10, 4294967168  ;;  %s19_s17 = sadd.s32 1, %s581_s17   ;;  %s799_s12 = smov %s565_s13 }
 0x130   : > { %p16_p6 = scmp.ge.s32.totalorder %s19_s17, 4   ;;  %s800_s13 = smov %s569_s14 }
 0x131   : > { %s801_s14 = smov %s662_s26  ;;  %s802_s15 = smov %s577_s16 }
 0x132   : > { %s803_s16 = smov %s805_s20  ;;  %18 = sbr.rel (!%p16_p6) target bundleno = 6 (0x6), region = 77 }
 0x139   :  { %317 = vsyncpa [#allocation3], 1 }
 0x13a   :  { %319 = vsyncpa [#allocation3 + $0x1], 1 }
 0x13b   :  { %320 = vsyncpa [#allocation4], 1 }
 0x13c   :  { %322 = vsyncpa [#allocation4 + $0x1], 1 }

</bundles_post_ra>
